<compile_context>
chip_gen: v7x
topology: tpu7x:2x2x1
jax: 0.10.0
libtpu: 0.0.40
codegen_flags: <defaults>
</compile_context>

<pallas_src>
import functools

import jax
import jax.numpy as jnp
from jax.experimental import pallas as pl
from jax.experimental.pallas import tpu as pltpu

_LANE = 128       # TPU lane width
_SUBLANE = 8      # f32 sublane count
_NEG_INF = -1e30  # fill for padded action lanes (avoid -inf to keep math clean)


def _round_up(n, m):
    return m * pl.cdiv(n, m)


def _actor_kernel(obs_ref, w1_ref, b1_ref, w2_ref, b2_ref, w3_ref, b3_ref,
                  act_ref, logp_ref, logpa_ref):
    # ---- MLP: bf16 MXU matmuls, f32 accumulation, f32 elementwise ----
    x = obs_ref[...].astype(jnp.bfloat16)
    h = jnp.dot(x, w1_ref[...], preferred_element_type=jnp.float32) + b1_ref[...]
    h = jnp.maximum(h, 0.0)                                   # ReLU (f32, VPU)

    h = jnp.dot(h.astype(jnp.bfloat16), w2_ref[...],
                preferred_element_type=jnp.float32) + b2_ref[...]
    h = jnp.maximum(h, 0.0)                                   # ReLU (f32, VPU)

    logits = jnp.dot(h.astype(jnp.bfloat16), w3_ref[...],
                     preferred_element_type=jnp.float32) + b3_ref[...]
    # output_activation = Identity -> nothing to do.
    # Padded action lanes already carry a -1e30 bias, so they vanish below.

    # ---- Categorical(logits) normalization: stable log-softmax ----
    m = jnp.max(logits, axis=-1, keepdims=True)
    lse = m + jnp.log(jnp.sum(jnp.exp(logits - m), axis=-1, keepdims=True))
    log_probs = logits - lse                                  # (TILE_B, A_pad)
    logp_ref[...] = log_probs                                 # lane-dense store

    # ---- pi.log_prob(act): one-hot select (no dynamic gather on TPU) ----
    # NOTE: out-of-range actions silently yield 0.0 (matches no bounds check).
    tb, a_pad = log_probs.shape
    col_ids = jax.lax.broadcasted_iota(jnp.int32, (tb, a_pad), dimension=1)
    act = act_ref[...]                                        # (TILE_B, 1) int32
    sel = jnp.where(col_ids == act, log_probs, 0.0)
    logpa = jnp.sum(sel, axis=-1, keepdims=True)              # (TILE_B, 1)
    # Lane-dense store: broadcast across 128 lanes instead of a masked 1-wide vst.
    logpa_ref[...] = jnp.broadcast_to(logpa, logpa_ref.shape)


@functools.partial(jax.jit, static_argnames=("tile_b",))
def actor_forward(obs, params, act, *, tile_b=256):
    """Fused Actor forward.

    Returns (pi_log_probs [B, A], logp_a [B]) mirroring Actor.forward(x, act).
    """
    w1, b1, w2, b2, w3, b3 = params
    B, F = obs.shape
    A = w3.shape[1]
    A_pad = _round_up(A, _LANE)

    # Batch tiling: tile is a multiple of 8, batch padded to a tile multiple.
    tb = min(_round_up(tile_b, _SUBLANE), _round_up(B, _SUBLANE))
    B_pad = _round_up(B, tb)
    n_tiles = B_pad // tb

    obs_p = jnp.pad(obs.astype(jnp.float32), ((0, B_pad - B), (0, 0)))
    act_p = jnp.pad(act.astype(jnp.int32).reshape(B, 1), ((0, B_pad - B), (0, 0)))

    # Pad the final layer so the logits / log-prob output is 128-lane dense.
    w3_p = jnp.pad(w3, ((0, 0), (0, A_pad - A)))
    b3_p = jnp.pad(b3, ((0, 0), (0, A_pad - A)), constant_values=_NEG_INF)

    # bf16 MXU operands (f32 accumulation inside the kernel); biases stay f32.
    w1_c = w1.astype(jnp.bfloat16)
    w2_c = w2.astype(jnp.bfloat16)
    w3_c = w3_p.astype(jnp.bfloat16)

    # Weights/biases: constant block index -> VMEM-resident across grid steps.
    resident = lambda arr: pl.BlockSpec(arr.shape, lambda i: (0, 0))

    log_probs, logp_a = pl.pallas_call(
        _actor_kernel,
        out_shape=(
            jax.ShapeDtypeStruct((B_pad, A_pad), jnp.float32),
            jax.ShapeDtypeStruct((B_pad, _LANE), jnp.float32),
        ),
        grid=(n_tiles,),
        in_specs=[
            pl.BlockSpec((tb, F), lambda i: (i, 0)),          # obs batch tile
            resident(w1_c), resident(b1),
            resident(w2_c), resident(b2),
            resident(w3_c), resident(b3_p),
            pl.BlockSpec((tb, 1), lambda i: (i, 0)),          # act batch tile
        ],
        out_specs=(
            pl.BlockSpec((tb, A_pad), lambda i: (i, 0)),
            pl.BlockSpec((tb, _LANE), lambda i: (i, 0)),
        ),
        compiler_params=pltpu.CompilerParams(
            dimension_semantics=("parallel",),                # megacore on v7x
        ),
    )(obs_p, w1_c, b1, w2_c, b2, w3_c, b3_p, act_p)

    return log_probs[:B, :A], logp_a[:B, 0]


def init_actor_params(key, input_dim, hidden_sizes, num_actions):
    """Deterministic synthetic init (uniform, PyTorch-Linear-like scaling)."""
    dims = [input_dim] + list(hidden_sizes) + [num_actions]
    params = []
    for i in range(len(dims) - 1):
        fan_in, fan_out = dims[i], dims[i + 1]
        key, kw, kb = jax.random.split(key, 3)
        bound = 1.0 / (fan_in ** 0.5)
        w = jax.random.uniform(kw, (fan_in, fan_out), jnp.float32, -bound, bound)
        b = jax.random.uniform(kb, (1, fan_out), jnp.float32, -bound, bound)
        params += [w, b]
    return tuple(params)


if __name__ == "__main__":
    # Small shapes consistent with the module's forward.
    B = 8                       # batch
    INPUT_DIM = (16,)           # obs feature dim
    HIDDEN = (32, 32)
    NUM_ACTIONS = 6

    key = jax.random.PRNGKey(0)
    key, k_obs, k_act = jax.random.split(key, 3)

    obs = jax.random.normal(k_obs, (B, INPUT_DIM[0]), dtype=jnp.float32)
    act = jax.random.randint(k_act, (B,), 0, NUM_ACTIONS, dtype=jnp.int32)

    params = init_actor_params(key, INPUT_DIM[0], HIDDEN, NUM_ACTIONS)

    # Pallas kernel forward
    pi_log_probs, logp_a = actor_forward(obs, params, act)
    jax.block_until_ready((pi_log_probs, logp_a))

    # Pure-JAX reference (same bf16 matmul operands, f32 accumulation)
    w1, b1, w2, b2, w3, b3 = params
    bf = lambda t: t.astype(jnp.bfloat16)
    h = jnp.maximum(jnp.dot(bf(obs), bf(w1), preferred_element_type=jnp.float32) + b1, 0.0)
    h = jnp.maximum(jnp.dot(bf(h), bf(w2), preferred_element_type=jnp.float32) + b2, 0.0)
    logits = jnp.dot(bf(h), bf(w3), preferred_element_type=jnp.float32) + b3
    ref_logp = jax.nn.log_softmax(logits, axis=-1)
    ref_logp_a = jnp.take_along_axis(ref_logp, act[:, None], axis=-1)[:, 0]

    assert pi_log_probs.shape == (B, NUM_ACTIONS)
    assert logp_a.shape == (B,)
    assert jnp.allclose(pi_log_probs, ref_logp, atol=1e-2, rtol=1e-2)
    assert jnp.allclose(logp_a, ref_logp_a, atol=1e-2, rtol=1e-2)

    # TODO(synk): Categorical .sample()/.act() (Gumbel-max over padded logits
    # via pltpu.prng_random_bits) could be fused in a follow-up; not part of
    # forward(x, act) semantics so omitted here.

    print("KERNEL_OK")
</pallas_src>

<mosaic_0001>
module attributes {stable_mosaic.version = 11 : i64} {
  func.func @_actor_kernel(%arg0: i32, %arg1: memref<8x16xf32, #tpu.memory_space<vmem>>, %arg2: memref<16x32xbf16, #tpu.memory_space<vmem>>, %arg3: memref<1x32xf32, #tpu.memory_space<vmem>>, %arg4: memref<32x32xbf16, #tpu.memory_space<vmem>>, %arg5: memref<1x32xf32, #tpu.memory_space<vmem>>, %arg6: memref<32x128xbf16, #tpu.memory_space<vmem>>, %arg7: memref<1x128xf32, #tpu.memory_space<vmem>>, %arg8: memref<8x1xi32, #tpu.memory_space<vmem>>, %arg9: memref<8x128xf32, #tpu.memory_space<vmem>>, %arg10: memref<8x128xf32, #tpu.memory_space<vmem>>) attributes {dimension_semantics = [#tpu.dimension_semantics<parallel>], iteration_bounds = array<i64: 1>, scalar_prefetch = 0 : i64, scratch_operands = 0 : i64, tpu.core_type = #tpu.core_type<tc>, window_params = [{transform_indices = @transform_0, window_bounds = array<i64: 8, 16>}, {pipeline_mode = #tpu.pipeline_mode<synchronous>, transform_indices = @transform_1, window_bounds = array<i64: 16, 32>}, {pipeline_mode = #tpu.pipeline_mode<synchronous>, transform_indices = @transform_2, window_bounds = array<i64: 1, 32>}, {pipeline_mode = #tpu.pipeline_mode<synchronous>, transform_indices = @transform_3, window_bounds = array<i64: 32, 32>}, {pipeline_mode = #tpu.pipeline_mode<synchronous>, transform_indices = @transform_4, window_bounds = array<i64: 1, 32>}, {pipeline_mode = #tpu.pipeline_mode<synchronous>, transform_indices = @transform_5, window_bounds = array<i64: 32, 128>}, {pipeline_mode = #tpu.pipeline_mode<synchronous>, transform_indices = @transform_6, window_bounds = array<i64: 1, 128>}, {transform_indices = @transform_7, window_bounds = array<i64: 8, 1>}, {transform_indices = @transform_8, window_bounds = array<i64: 8, 128>}, {transform_indices = @transform_9, window_bounds = array<i64: 8, 128>}]} {
    %c0 = arith.constant 0 : index
    %c0_0 = arith.constant 0 : index
    %0 = vector.load %arg1[%c0, %c0_0] : memref<8x16xf32, #tpu.memory_space<vmem>>, vector<8x16xf32>
    %1 = arith.truncf %0 : vector<8x16xf32> to vector<8x16xbf16>
    %c0_1 = arith.constant 0 : index
    %c0_2 = arith.constant 0 : index
    %2 = vector.load %arg2[%c0_1, %c0_2] : memref<16x32xbf16, #tpu.memory_space<vmem>>, vector<16x32xbf16>
    %cst = arith.constant dense<0.000000e+00> : vector<8x32xf32>
    %3 = tpu.matmul %1, %2, %cst {dimension_numbers = #tpu.dot_dimension_numbers<[1], [0], [0], [1], [0, 0, 1, 1], [], []>} : vector<8x16xbf16>, vector<16x32xbf16>, vector<8x32xf32> -> vector<8x32xf32>
    %c0_3 = arith.constant 0 : index
    %c0_4 = arith.constant 0 : index
    %4 = vector.load %arg3[%c0_3, %c0_4] : memref<1x32xf32, #tpu.memory_space<vmem>>, vector<1x32xf32>
    %5 = vector.broadcast %4 : vector<1x32xf32> to vector<8x32xf32>
    %6 = arith.addf %3, %5 : vector<8x32xf32>
    %cst_5 = arith.constant 0.000000e+00 : f32
    %7 = vector.broadcast %cst_5 : f32 to vector<8x32xf32>
    %8 = arith.maximumf %6, %7 : vector<8x32xf32>
    %9 = arith.truncf %8 : vector<8x32xf32> to vector<8x32xbf16>
    %c0_6 = arith.constant 0 : index
    %c0_7 = arith.constant 0 : index
    %10 = vector.load %arg4[%c0_6, %c0_7] : memref<32x32xbf16, #tpu.memory_space<vmem>>, vector<32x32xbf16>
    %cst_8 = arith.constant dense<0.000000e+00> : vector<8x32xf32>
    %11 = tpu.matmul %9, %10, %cst_8 {dimension_numbers = #tpu.dot_dimension_numbers<[1], [0], [0], [1], [0, 0, 1, 1], [], []>} : vector<8x32xbf16>, vector<32x32xbf16>, vector<8x32xf32> -> vector<8x32xf32>
    %c0_9 = arith.constant 0 : index
    %c0_10 = arith.constant 0 : index
    %12 = vector.load %arg5[%c0_9, %c0_10] : memref<1x32xf32, #tpu.memory_space<vmem>>, vector<1x32xf32>
    %13 = vector.broadcast %12 : vector<1x32xf32> to vector<8x32xf32>
    %14 = arith.addf %11, %13 : vector<8x32xf32>
    %cst_11 = arith.constant 0.000000e+00 : f32
    %15 = vector.broadcast %cst_11 : f32 to vector<8x32xf32>
    %16 = arith.maximumf %14, %15 : vector<8x32xf32>
    %17 = arith.truncf %16 : vector<8x32xf32> to vector<8x32xbf16>
    %c0_12 = arith.constant 0 : index
    %c0_13 = arith.constant 0 : index
    %18 = vector.load %arg6[%c0_12, %c0_13] : memref<32x128xbf16, #tpu.memory_space<vmem>>, vector<32x128xbf16>
    %cst_14 = arith.constant dense<0.000000e+00> : vector<8x128xf32>
    %19 = tpu.matmul %17, %18, %cst_14 {dimension_numbers = #tpu.dot_dimension_numbers<[1], [0], [0], [1], [0, 0, 1, 1], [], []>} : vector<8x32xbf16>, vector<32x128xbf16>, vector<8x128xf32> -> vector<8x128xf32>
    %c0_15 = arith.constant 0 : index
    %c0_16 = arith.constant 0 : index
    %20 = vector.load %arg7[%c0_15, %c0_16] : memref<1x128xf32, #tpu.memory_space<vmem>>, vector<1x128xf32>
    %21 = vector.broadcast %20 : vector<1x128xf32> to vector<8x128xf32>
    %22 = arith.addf %19, %21 : vector<8x128xf32>
    %cst_17 = arith.constant dense<0xFF800000> : vector<8xf32>
    %23 = vector.multi_reduction <maximumf>, %22, %cst_17 [1] : vector<8x128xf32> to vector<8xf32>
    %24 = vector.shape_cast %23 : vector<8xf32> to vector<8x1xf32>
    %25 = vector.broadcast %24 : vector<8x1xf32> to vector<8x128xf32>
    %26 = arith.subf %22, %25 : vector<8x128xf32>
    %27 = math.exp %26 : vector<8x128xf32>
    %cst_18 = arith.constant dense<0.000000e+00> : vector<8xf32>
    %28 = vector.multi_reduction <add>, %27, %cst_18 [1] : vector<8x128xf32> to vector<8xf32>
    %29 = vector.shape_cast %28 : vector<8xf32> to vector<8x1xf32>
    %30 = math.log %29 : vector<8x1xf32>
    %31 = arith.addf %24, %30 : vector<8x1xf32>
    %32 = vector.broadcast %31 : vector<8x1xf32> to vector<8x128xf32>
    %33 = arith.subf %22, %32 : vector<8x128xf32>
    %c0_19 = arith.constant 0 : index
    %c0_20 = arith.constant 0 : index
    %34 = vector.load %arg9[%c0_19, %c0_20] : memref<8x128xf32, #tpu.memory_space<vmem>>, vector<8x128xf32>
    tpu.vector_store %arg9[%c0_19, %c0_20], %33 {strides = array<i32>} : memref<8x128xf32, #tpu.memory_space<vmem>>, vector<8x128xf32>,
    %35 = tpu.iota {dimensions = array<i32: 1>} : vector<8x128xi32>
    %c0_21 = arith.constant 0 : index
    %c0_22 = arith.constant 0 : index
    %36 = vector.load %arg8[%c0_21, %c0_22] : memref<8x1xi32, #tpu.memory_space<vmem>>, vector<8x1xi32>
    %37 = vector.broadcast %36 : vector<8x1xi32> to vector<8x128xi32>
    %38 = arith.cmpi eq, %35, %37 : vector<8x128xi32>
    %cst_23 = arith.constant 0.000000e+00 : f32
    %39 = vector.broadcast %cst_23 : f32 to vector<8x128xf32>
    %40 = arith.select %38, %33, %39 : vector<8x128xi1>, vector<8x128xf32>
    %cst_24 = arith.constant dense<0.000000e+00> : vector<8xf32>
    %41 = vector.multi_reduction <add>, %40, %cst_24 [1] : vector<8x128xf32> to vector<8xf32>
    %42 = vector.shape_cast %41 : vector<8xf32> to vector<8x1xf32>
    %43 = vector.shape_cast %42 : vector<8x1xf32> to vector<8x1xf32>
    %44 = vector.broadcast %43 : vector<8x1xf32> to vector<8x128xf32>
    %c0_25 = arith.constant 0 : index
    %c0_26 = arith.constant 0 : index
    %45 = vector.load %arg10[%c0_25, %c0_26] : memref<8x128xf32, #tpu.memory_space<vmem>>, vector<8x128xf32>
    tpu.vector_store %arg10[%c0_25, %c0_26], %44 {strides = array<i32>} : memref<8x128xf32, #tpu.memory_space<vmem>>, vector<8x128xf32>,
    return
  }
  func.func @transform_0(%arg0: i32) -> (i32, i32) {
    %c0_i32 = arith.constant 0 : i32
    %c0_i32_0 = arith.constant 0 : i32
    return %arg0, %c0_i32 : i32, i32
  }
  func.func @transform_1(%arg0: i32) -> (i32, i32) {
    %c0_i32 = arith.constant 0 : i32
    %c0_i32_0 = arith.constant 0 : i32
    %c0_i32_1 = arith.constant 0 : i32
    return %c0_i32, %c0_i32_0 : i32, i32
  }
  func.func @transform_2(%arg0: i32) -> (i32, i32) {
    %c0_i32 = arith.constant 0 : i32
    %c0_i32_0 = arith.constant 0 : i32
    %c0_i32_1 = arith.constant 0 : i32
    return %c0_i32, %c0_i32_0 : i32, i32
  }
  func.func @transform_3(%arg0: i32) -> (i32, i32) {
    %c0_i32 = arith.constant 0 : i32
    %c0_i32_0 = arith.constant 0 : i32
    %c0_i32_1 = arith.constant 0 : i32
    return %c0_i32, %c0_i32_0 : i32, i32
  }
  func.func @transform_4(%arg0: i32) -> (i32, i32) {
    %c0_i32 = arith.constant 0 : i32
    %c0_i32_0 = arith.constant 0 : i32
    %c0_i32_1 = arith.constant 0 : i32
    return %c0_i32, %c0_i32_0 : i32, i32
  }
  func.func @transform_5(%arg0: i32) -> (i32, i32) {
    %c0_i32 = arith.constant 0 : i32
    %c0_i32_0 = arith.constant 0 : i32
    %c0_i32_1 = arith.constant 0 : i32
    return %c0_i32, %c0_i32_0 : i32, i32
  }
  func.func @transform_6(%arg0: i32) -> (i32, i32) {
    %c0_i32 = arith.constant 0 : i32
    %c0_i32_0 = arith.constant 0 : i32
    %c0_i32_1 = arith.constant 0 : i32
    return %c0_i32, %c0_i32_0 : i32, i32
  }
  func.func @transform_7(%arg0: i32) -> (i32, i32) {
    %c0_i32 = arith.constant 0 : i32
    %c0_i32_0 = arith.constant 0 : i32
    return %arg0, %c0_i32 : i32, i32
  }
  func.func @transform_8(%arg0: i32) -> (i32, i32) {
    %c0_i32 = arith.constant 0 : i32
    %c0_i32_0 = arith.constant 0 : i32
    return %arg0, %c0_i32 : i32, i32
  }
  func.func @transform_9(%arg0: i32) -> (i32, i32) {
    %c0_i32 = arith.constant 0 : i32
    %c0_i32_0 = arith.constant 0 : i32
    return %arg0, %c0_i32 : i32, i32
  }
}

</mosaic_0001>

<bundles_post_ra>
// kernel: actor_forward.1
= control target key start
LH: loop header
LB: loop body
LE: loop exit
PB: predicated region body
PF: predicated region fallthrough
CT: control target
= control target key end

     0   :  { %v352_v1 = vmov 0.0   ;;  %vm50_vm0 = vcmask 130048   ;;  %vm353_vm1 = vmmov 0   ;;  %s451_s0 = inlined_call_operand.vmem [shape: f32[8,16], index: 0, kind: input, shape index: {}]   ;;  %s452_s1 = inlined_call_operand.vmem [shape: bf16[16,32], index: 1, kind: input, shape index: {}]   ;;  %s453_s2 = inlined_call_operand.vmem [shape: f32[1,32], index: 2, kind: input, shape index: {}]   ;;  %s454_s3 = inlined_call_operand.vmem [shape: bf16[32,32], index: 3, kind: input, shape index: {}]   ;;  %s455_s4 = inlined_call_operand.vmem [shape: f32[1,32], index: 4, kind: input, shape index: {}]   ;;  %s456_s5 = inlined_call_operand.vmem [shape: bf16[32,128], index: 5, kind: input, shape index: {}]   ;;  %s457_s6 = inlined_call_operand.vmem [shape: f32[1,128], index: 6, kind: input, shape index: {}]   ;;  %s458_s7 = inlined_call_operand.vmem [shape: s32[8,1], index: 7, kind: input, shape index: {}]   ;;  %s459_s8 = inlined_call_operand.hbm [shape: f32[8,128], index: 8, kind: output, shape index: {0}]   ;;  %s460_s9 = inlined_call_operand.vmem [shape: f32[8,128], index: 9, kind: output, shape index: {1}]  }
   0x1   :  { %v319_v0 = vld [vmem:[%s452_s1] sm:$0xff]   ;;  %291 = vmatprep.subr.bf16.mxu0 %v352_v1  ;;  %297 = vmatprep.subr.bf16.mxu1 %v352_v1 }
   0x2   :  { %v33_v2 = vld [vmem:[%s451_s0] sm:$0xff]  ;;  %292 = vmatpush3.bf16.msra.mxu0 %v319_v0  ;;  %293 = vmatprep.mubr.msk.bf16.mxu0 %vm353_vm1, %v352_v1 }
   0x3   :  { %v34_v3 = vpack.c.bf16 %v33_v2, %v33_v2  ;;  %301 = vmatprep.mubr.msk.bf16.mxu1 %vm353_vm1, %v352_v1  ;;  %305 = vmatprep.subr.bf16.mxu0 %v352_v1 }
   0x4   :  { %15 = vsyncpa [#allocation3], 0  ;;  %v320_v4 = vld [vmem:[%s454_s3] sm:$0xff]   ;;  %v321_v5 = vld [vmem:[%s454_s3 + $0x8] sm:$0xff]   ;;  %vm119_vm2 = vcmask 261120   ;;  %v354_v31 = vmov 0   ;;  %v243_v37 = vlaneseq }
   0x5   :  { %294 = vmatmul.mubr.msk.bf16.vlgmr.msra.gmra.mrb[0].mxu0 %vm50_vm0, %v34_v3  ;;  %298 = vmatpush3.bf16.msra.mxu1 %v320_v4  ;;  %v322_v6 = vld [vmem:[%s456_s5] sm:$0xff]   ;;  %v323_v15 = vld [vmem:[%s456_s5 + $0x8] sm:$0xff]  }
   0x6   :  { %309 = vmatprep.mubr.msk.bf16.mxu0 %vm353_vm1, %v352_v1  ;;  %299 = vmatprep.subr.bf16.mxu1 %v352_v1  ;;  %v272_v7 = vld [vmem:[%s453_s2] ss:$0 sm:$0xff]  ;;  %v244_v39 = vand.u32 127, %v243_v37 }
   0x7   :  { %306 = vmatpush3.bf16.msra.mxu0 %v322_v6  ;;  %v275_v16 = vld [vmem:[%s455_s4] ss:$0 sm:$0xff]  ;;  %317 = vset.pattern.permute.xlu1 %v354_v31 }
   0x8   :  { %307 = vmatprep.subr.bf16.mxu0 %v352_v1  ;;  %v279_v24 = vld [vmem:[%s457_s6] ss:$0 sm:$0xff]  ;;  %318 = vset.pattern.permute.xlu0 %v354_v31  ;;  %s355_s6 = smov [#allocation2]  }
   0x9   :  { %300 = vmatpush3.bf16.msra.mxu1 %v321_v5  ;;  %v245_v30 = vld [vmem:[%s458_s7] sm:$0xff]  ;;  %s260_s7 = sshll.u32 %s355_s6, 4  ;;  %s261_s7 = int_to_ptr.vmem [resolvable:$true] %s260_s7 }
   0xa   :  { %247 = vperm.xlu1 %317, %v245_v30   ;;  %s328_s23 = scalar_lea.vmem %s261_s7, 128  ;;  %p333_p1 = scmp.lt.s32.totalorder %s261_s7, %s261_s7 }
   0xb   :  { %308 = vmatpush3.bf16.msra.mxu0 %v323_v15  ;;  %p329_p0 = scmp.ne.s32.totalorder %s261_s7, %s328_s23  ;;  %p334_p2 = scmp.lt.s32.totalorder %s328_s23, %s328_s23 }
   0xd   :  { %p335_p3 = por %p334_p2, %p333_p1 }
   0xf   :  { %p336_p4 = pnand %p335_p3, %p329_p0 }
  0x89   :  { %v248_v41 = vpop.permute.xlu1 %247 }
  0x8a   :  { %vm249_vm3 = vcmp.eq.s32.totalorder %v244_v39, %v248_v41 }
  0xd8   :  { %v88_v8 = vpop.f32.mrb[0].mxu0 }
  0xd9   :  { %v89_v9 = vadd.f32 %v272_v7, %v88_v8  ;;  %v295_v10 = vpop.f32.mrb[1].mxu0 }
  0xda   :  { %v91_v11 = vpop.f32.mrb[2].mxu0 }
  0xdb   :  { %v94_v12 = vmax.f32 %v89_v9, 0.0  ;;  %v296_v13 = vpop.f32.mrb[3].mxu0 }
  0xdd   :  { %v95_v14 = vpack.c.bf16 %v94_v12, %v94_v12 }
  0xdf   :  { %302 = vmatmul.mubr.msk.bf16.vlgmr.msra.gmra.mrb[0].mxu1 %vm119_vm2, %v95_v14 }
 0x1b2   :  { %v157_v17 = vpop.f32.mrb[0].mxu1 }
 0x1b3   :  { %v158_v18 = vadd.f32 %v275_v16, %v157_v17  ;;  %v303_v19 = vpop.f32.mrb[1].mxu1 }
 0x1b4   :  { %v160_v20 = vpop.f32.mrb[2].mxu1 }
 0x1b5   :  { %v163_v21 = vmax.f32 %v158_v18, 0.0  ;;  %v304_v22 = vpop.f32.mrb[3].mxu1 }
 0x1b7   :  { %v164_v23 = vpack.c.bf16 %v163_v21, %v163_v21 }
 0x1b9   :  { %310 = vmatmul.mubr.msk.bf16.vlgmr.msra.gmra.mrb[4].mxu0 %vm119_vm2, %v164_v23 }
 0x28c   :  { %v225_v25 = vpop.f32.mrb[4].mxu0 }
 0x28d   :  { %v226_v26 = vadd.f32 %v279_v24, %v225_v25  ;;  %v311_v27 = vpop.f32.mrb[5].mxu0 }
 0x28e   :  { %v228_v28 = vpop.f32.mrb[6].mxu0 }
 0x28f   :  { %231 = vmax.xlane.f32.xlu0 %v226_v26  ;;  %v312_v29 = vpop.f32.mrb[7].mxu0 }
 0x31c   :  { %v232_v32 = vpop.xlane.xlu0 %231 }
 0x31d   :  { %v233_v33 = vsub.f32 %v226_v26, %v232_v32 }
 0x31f   :  { %v234_v34 = vmul.f32 1.442695, %v233_v33 }
 0x321   :  { %324 = vpow2.f32 %v234_v34 }
 0x32b   :  { %v325_v35 = vpop.eup %324 }
 0x32c   :  { %236 = vadd.xlane.f32.xlu0 %v325_v35 }
 0x3b9   :  { %v237_v36 = vpop.xlane.xlu0 %236 }
 0x3ba   :  { %326 = vlog2.f32 %v237_v36 }
 0x3c4   :  { %v327_v38 = vpop.eup %326 }
 0x3c5   :  { %v239_v40 = vmul.f32 0.6931472, %v327_v38 }
 0x3c7   :  { %v240_v42 = vadd.f32 %v239_v40, %v232_v32 }
 0x3c9   :  { %v241_v43 = vsub.f32 %v226_v26, %v240_v42 }
 0x3cb   :  { %v250_v44 = vsel %vm249_vm3, %v241_v43, 0.0  ;;  %242 = vst [vmem:[#allocation2] sm:$0xff] %v241_v43 }
 0x3cc   :  { %251 = vadd.xlane.f32.xlu1 %v250_v44 }
 0x3cd   :  { %339 = shalt.err (!%p336_p4)
}
 0x3ce   :  { %s340_s26 = scalar_lea.hbm %s459_s8, 128 }
 0x3cf   :  { %p341_p5 = scmp.ne.s32.totalorder %s459_s8, %s340_s26  ;;  %p344_p6 = scmp.lt.u32.totalorder %s340_s26, %s459_s8 }
 0x3d1   :  { %p346_p7 = pnand %p344_p6, %p341_p5 }
 0x3d3   :  { %349 = shalt.err (!%p346_p7)
}
 0x3d4   :  { %263 = dma.vmem_to_hbm [thread:$0]  %s261_s7, 128, %s459_s8, [#allocation3]  }
 0x459   :  { %v252_v45 = vpop.xlane.xlu1 %251 }
 0x45a   :  { %253 = vst [vmem:[%s460_s9] sm:$0xff] %v252_v45 }
 0x45b   :  { %350 = dma.done.wait [#allocation3], 128  }
 0x45c   :  { %351 = vsyncadd [#allocation3], 4294967168 }
 0x45d   :  { %271 = vsyncpa [#allocation3], 1 }

</bundles_post_ra>
